<compile_context>
chip_gen: v5e
topology: v5e:2x2
jax: 0.10.0
libtpu: 0.0.40
codegen_flags: <defaults>
</compile_context>

<pallas_src>
import jax
import jax.numpy as jnp
from jax import lax
from jax.experimental import pallas as pl
from jax.experimental.pallas import tpu as pltpu


def _round_up(n, m):
    return ((n + m - 1) // m) * m


def _vmem_cap_bytes():
    try:
        return int(pltpu.get_tpu_info().vmem_capacity_bytes)
    except Exception:
        return 64 << 20  # conservative default (v7x per-TC VMEM)


def _highway_layer(x, w, b):
    """One highway layer on packed, pre-transposed weights.

    x: (Bt, Sp) f32.  w: (Sp, 3*Sp) f32/bf16 = [Wg.T | Wn.T | Wl.T].
    b: (1, 3*Sp) f32.  Accumulation is always f32 on the MXU.
    """
    S = x.shape[1]
    z = jnp.dot(x.astype(w.dtype), w, preferred_element_type=jnp.float32)
    z = z + b.astype(jnp.float32)
    gate = jax.nn.sigmoid(z[:, :S])
    nonlinear = jnp.maximum(z[:, S:2 * S], 0.0)   # f = ReLU
    linear = z[:, 2 * S:]
    # gate*nl + (1-gate)*lin  ==  lin + gate*(nl - lin)   (one fewer VPU mul)
    return linear + gate * (nonlinear - linear)


def _highway_kernel_fused(x_ref, w_ref, b_ref, o_ref):
    """Small-model path: all layers in one invocation, weights VMEM-resident."""
    num_layers = w_ref.shape[0]
    x0 = x_ref[...].astype(jnp.float32)

    def body(l, x):
        return _highway_layer(x, w_ref[l], b_ref[l])

    x_out = lax.fori_loop(0, num_layers, body, x0, unroll=True)
    o_ref[...] = x_out.astype(o_ref.dtype)


def _highway_kernel_grid(x_ref, w_ref, b_ref, o_ref, x_scratch):
    """Streaming path: grid=(batch_tiles, layer_chunks); one chunk of C packed
    weight blocks is streamed per step; activation persists in f32 scratch."""
    chunk = pl.program_id(1)

    @pl.when(chunk == 0)
    def _():
        x_scratch[...] = x_ref[...].astype(jnp.float32)

    layers_per_chunk = w_ref.shape[0]

    def body(l, x):
        return _highway_layer(x, w_ref[l], b_ref[l])

    x_new = lax.fori_loop(0, layers_per_chunk, body, x_scratch[...],
                          unroll=True)
    x_scratch[...] = x_new

    @pl.when(chunk == pl.num_programs(1) - 1)
    def _():
        o_ref[...] = x_new.astype(o_ref.dtype)


def highway_pallas(x, w_gate, b_gate, w_nl, b_nl, w_lin, b_lin, *,
                   param_dtype=jnp.bfloat16,          # bf16 weights by default
                   force_grid=False,
                   fused_weight_budget_bytes=4 << 20,
                   target_chunk_bytes=4 << 20,
                   max_layers_per_step=None,
                   max_batch_tile=256):
    """x: (B, S); weights: (L, S, S) PyTorch Linear layout; biases: (L, S)."""
    B, S = x.shape
    L = w_gate.shape[0]
    out_dtype = x.dtype

    # Lane/sublane-dense padding: last dim -> mult of 128, batch -> mult of 8.
    Sp = max(_round_up(S, 128), 128)
    Bp = max(_round_up(B, 8), 8)
    # Bound the per-step row tile (vreg / VMEM temporaries) via batch tiling.
    if Bp > max_batch_tile:
        Bt = max_batch_tile
        Bp = _round_up(Bp, Bt)
    else:
        Bt = Bp

    def pad_w(w):  # (L, S_out, S_in) -> (L, Sp, Sp), zero-padded
        return jnp.pad(w, ((0, 0), (0, Sp - S), (0, Sp - S)))

    def pad_b(b):  # (L, S) -> (L, Sp)
        return jnp.pad(b, ((0, 0), (0, Sp - S)))

    # Pre-transpose to right-multiply layout and fuse the three projections:
    #   W_packed[l] = [Wg[l].T | Wn[l].T | Wl[l].T] : (Sp, 3*Sp)
    w_packed = jnp.concatenate(
        [jnp.transpose(pad_w(w_gate), (0, 2, 1)),
         jnp.transpose(pad_w(w_nl), (0, 2, 1)),
         jnp.transpose(pad_w(w_lin), (0, 2, 1))], axis=2)
    b_packed = jnp.concatenate(
        [pad_b(b_gate), pad_b(b_nl), pad_b(b_lin)], axis=1).astype(jnp.float32)

    if param_dtype is not None:
        w_packed = w_packed.astype(param_dtype)
    w_item = w_packed.dtype.itemsize

    # NOTE: padded batch rows / feature cols compute sigmoid(b)/relu(b) garbage
    # inside the kernel but matmul rows are independent, so they cannot
    # contaminate real rows; they are sliced off below (wasted work, not a bug).
    x_p = jnp.pad(x, ((0, Bp - B), (0, Sp - S)))

    vmem_cap = max(_vmem_cap_bytes() - (8 << 20), 32 << 20)
    per_layer_w = Sp * 3 * Sp * w_item
    per_layer_b = 3 * Sp * 4
    total_params = L * (per_layer_w + per_layer_b)
    out_item = jnp.dtype(out_dtype).itemsize

    if (not force_grid) and total_params <= fused_weight_budget_bytes and Bt == Bp:
        # Whole weight stack fits comfortably in VMEM: single invocation.
        act = Bp * Sp
        need = (2 * total_params
                + 2 * act * x_p.dtype.itemsize
                + 2 * act * out_item
                + 8 * act * 4            # z (3*Sp wide) + gate/nl/lin temps
                + (2 << 20))
        vmem_limit = int(min(max(need, 32 << 20), vmem_cap))
        out_p = pl.pallas_call(
            _highway_kernel_fused,
            out_shape=jax.ShapeDtypeStruct((Bp, Sp), out_dtype),
            compiler_params=pltpu.CompilerParams(vmem_limit_bytes=vmem_limit),
        )(x_p, w_packed, b_packed.reshape(L, 1, 3 * Sp))
    else:
        act = Bt * Sp
        fixed = (2 * act * x_p.dtype.itemsize   # x input buffers
                 + 2 * act * out_item           # output buffers
                 + act * 4                      # activation scratch (f32)
                 + 8 * act * 4                  # z + gate/nl/lin temporaries
                 + (2 << 20))                   # headroom

        # Layers-per-step chunk: big enough to amortize the ~0.35us step
        # overhead, small enough that the double-buffered chunk fits VMEM.
        C = max(1, int(target_chunk_bytes // per_layer_w))
        if max_layers_per_step is not None:
            C = min(C, int(max_layers_per_step))
        C = min(C, L)
        while C > 1 and 2 * C * (per_layer_w + per_layer_b) + fixed > vmem_cap:
            C -= 1
        Lp = _round_up(L, C)

        if Lp != L:
            # Pad with EXACT identity layers: gate -> 0 (huge negative bias),
            # nonlinear -> 0, linear -> identity, so x passes through unchanged.
            n_pad = Lp - L
            eye = jnp.eye(Sp, dtype=w_packed.dtype)
            zeros = jnp.zeros((Sp, Sp), dtype=w_packed.dtype)
            w_id = jnp.concatenate([zeros, zeros, eye], axis=1)
            w_packed = jnp.concatenate(
                [w_packed, jnp.broadcast_to(w_id, (n_pad, Sp, 3 * Sp))], axis=0)
            b_id = jnp.concatenate(
                [jnp.full((Sp,), -1e30, jnp.float32),
                 jnp.zeros((2 * Sp,), jnp.float32)])
            b_packed = jnp.concatenate(
                [b_packed, jnp.broadcast_to(b_id, (n_pad, 3 * Sp))], axis=0)

        b_grid = b_packed.reshape(Lp, 1, 3 * Sp)
        num_btiles = Bp // Bt
        num_chunks = Lp // C

        need = 2 * C * (per_layer_w + per_layer_b) + fixed
        vmem_limit = int(min(max(need, 32 << 20), vmem_cap))

        out_p = pl.pallas_call(
            _highway_kernel_grid,
            out_shape=jax.ShapeDtypeStruct((Bp, Sp), out_dtype),
            grid_spec=pltpu.PrefetchScalarGridSpec(
                num_scalar_prefetch=0,
                grid=(num_btiles, num_chunks),
                in_specs=[
                    pl.BlockSpec((Bt, Sp), lambda b, c: (b, 0)),
                    pl.BlockSpec((C, Sp, 3 * Sp), lambda b, c: (c, 0, 0)),
                    pl.BlockSpec((C, 1, 3 * Sp), lambda b, c: (c, 0, 0)),
                ],
                out_specs=pl.BlockSpec((Bt, Sp), lambda b, c: (b, 0)),
                scratch_shapes=[pltpu.VMEM((Bt, Sp), jnp.float32)],
            ),
            compiler_params=pltpu.CompilerParams(
                dimension_semantics=("parallel", "arbitrary"),
                vmem_limit_bytes=vmem_limit),
        )(x_p, w_packed, b_grid)

    if (Bp, Sp) != (B, S):
        out_p = out_p[:B, :S]
    return out_p


def highway_ref(x, w_gate, b_gate, w_nl, b_nl, w_lin, b_lin):
    """Pure-JAX reference replicating the PyTorch forward (f = ReLU)."""
    out = x
    for l in range(w_gate.shape[0]):
        gate = jax.nn.sigmoid(out @ w_gate[l].T + b_gate[l])
        nonlinear = jnp.maximum(out @ w_nl[l].T + b_nl[l], 0.0)
        linear = out @ w_lin[l].T + b_lin[l]
        out = gate * nonlinear + (1.0 - gate) * linear
    return out


def _make_params(key, B, S, L):
    keys = jax.random.split(key, 7)
    scale = 1.0 / jnp.sqrt(S)
    x = jax.random.normal(keys[0], (B, S), dtype=jnp.float32)
    w_gate = jax.random.normal(keys[1], (L, S, S), dtype=jnp.float32) * scale
    b_gate = jax.random.normal(keys[2], (L, S), dtype=jnp.float32) * 0.1
    w_nl = jax.random.normal(keys[3], (L, S, S), dtype=jnp.float32) * scale
    b_nl = jax.random.normal(keys[4], (L, S), dtype=jnp.float32) * 0.1
    w_lin = jax.random.normal(keys[5], (L, S, S), dtype=jnp.float32) * scale
    b_lin = jax.random.normal(keys[6], (L, S), dtype=jnp.float32) * 0.1
    return x, w_gate, b_gate, w_nl, b_nl, w_lin, b_lin


if __name__ == "__main__":
    k1, k2, k3 = jax.random.split(jax.random.PRNGKey(0), 3)

    # Case 1: small aligned shapes, exact f32 weights, fused single-invocation.
    args = _make_params(k1, 8, 64, 2)
    ref = highway_ref(*args)
    out = jax.block_until_ready(highway_pallas(*args, param_dtype=jnp.float32))
    assert out.shape == (8, 64)
    assert jnp.allclose(out, ref, atol=1e-4, rtol=1e-4), "fused f32 mismatch"

    # Case 2: streaming grid path with layer chunking (L=3, 2 layers/step ->
    # one identity-padded remainder layer) and non-aligned B/S padding.
    args3 = _make_params(k2, 6, 48, 3)
    ref3 = highway_ref(*args3)
    out3 = jax.block_until_ready(
        highway_pallas(*args3, param_dtype=jnp.float32, force_grid=True,
                       max_layers_per_step=2))
    assert out3.shape == (6, 48)
    assert jnp.allclose(out3, ref3, atol=1e-4, rtol=1e-4), "grid f32 mismatch"

    # Case 3: batch-tiled grid path (2 batch tiles on the 'parallel' axis).
    args4 = _make_params(k3, 16, 64, 2)
    ref4 = highway_ref(*args4)
    out4 = jax.block_until_ready(
        highway_pallas(*args4, param_dtype=jnp.float32, force_grid=True,
                       max_batch_tile=8))
    assert out4.shape == (16, 64)
    assert jnp.allclose(out4, ref4, atol=1e-4, rtol=1e-4), "batch-tile mismatch"

    # Case 4: default bf16 weight path (halved HBM weight traffic), loose tol.
    out_b = jax.block_until_ready(highway_pallas(*args))
    assert jnp.allclose(out_b, ref, atol=1e-1, rtol=1e-1), "bf16 mismatch"

    print("KERNEL_OK")
</pallas_src>

<mosaic_0001>
module attributes {stable_mosaic.version = 11 : i64} {
  func.func @_highway_kernel_fused(%arg0: memref<8x128xf32, #tpu.memory_space<vmem>>, %arg1: memref<2x128x384xf32, #tpu.memory_space<vmem>>, %arg2: memref<2x1x384xf32, #tpu.memory_space<vmem>>, %arg3: memref<8x128xf32, #tpu.memory_space<vmem>>) attributes {dimension_semantics = [], scalar_prefetch = 0 : i64, scratch_operands = 0 : i64, tpu.core_type = #tpu.core_type<tc>} {
    %c0 = arith.constant 0 : index
    %c0_0 = arith.constant 0 : index
    %0 = vector.load %arg0[%c0, %c0_0] : memref<8x128xf32, #tpu.memory_space<vmem>>, vector<8x128xf32>
    %c0_i32 = arith.constant 0 : i32
    %1 = arith.index_cast %c0_i32 : i32 to index
    %c0_1 = arith.constant 0 : index
    %c0_2 = arith.constant 0 : index
    %2 = vector.load %arg1[%1, %c0_1, %c0_2] : memref<2x128x384xf32, #tpu.memory_space<vmem>>, vector<1x128x384xf32>
    %3 = vector.shape_cast %2 : vector<1x128x384xf32> to vector<128x384xf32>
    %4 = arith.index_cast %c0_i32 : i32 to index
    %c0_3 = arith.constant 0 : index
    %c0_4 = arith.constant 0 : index
    %5 = vector.load %arg2[%4, %c0_3, %c0_4] : memref<2x1x384xf32, #tpu.memory_space<vmem>>, vector<1x1x384xf32>
    %6 = vector.shape_cast %5 : vector<1x1x384xf32> to vector<1x384xf32>
    %cst = arith.constant dense<0.000000e+00> : vector<8x384xf32>
    %7 = tpu.matmul %0, %3, %cst {dimension_numbers = #tpu.dot_dimension_numbers<[1], [0], [0], [1], [0, 0, 1, 1], [], []>} : vector<8x128xf32>, vector<128x384xf32>, vector<8x384xf32> -> vector<8x384xf32>
    %8 = vector.broadcast %6 : vector<1x384xf32> to vector<8x384xf32>
    %9 = arith.addf %7, %8 : vector<8x384xf32>
    %10 = vector.extract_strided_slice %9 {offsets = [0, 0], sizes = [8, 128], strides = [1, 1]} : vector<8x384xf32> to vector<8x128xf32>
    %11 = arith.negf %10 : vector<8x128xf32>
    %12 = math.exp %11 : vector<8x128xf32>
    %cst_5 = arith.constant 1.000000e+00 : f32
    %13 = vector.broadcast %cst_5 : f32 to vector<8x128xf32>
    %14 = arith.addf %13, %12 : vector<8x128xf32>
    %15 = arith.divf %13, %14 : vector<8x128xf32>
    %16 = vector.extract_strided_slice %9 {offsets = [0, 128], sizes = [8, 128], strides = [1, 1]} : vector<8x384xf32> to vector<8x128xf32>
    %cst_6 = arith.constant 0.000000e+00 : f32
    %17 = vector.broadcast %cst_6 : f32 to vector<8x128xf32>
    %18 = arith.maximumf %16, %17 : vector<8x128xf32>
    %19 = vector.extract_strided_slice %9 {offsets = [0, 256], sizes = [8, 128], strides = [1, 1]} : vector<8x384xf32> to vector<8x128xf32>
    %20 = arith.subf %18, %19 : vector<8x128xf32>
    %21 = arith.mulf %15, %20 : vector<8x128xf32>
    %22 = arith.addf %19, %21 : vector<8x128xf32>
    %c1_i32 = arith.constant 1 : i32
    %23 = arith.index_cast %c1_i32 : i32 to index
    %c0_7 = arith.constant 0 : index
    %c0_8 = arith.constant 0 : index
    %24 = vector.load %arg1[%23, %c0_7, %c0_8] : memref<2x128x384xf32, #tpu.memory_space<vmem>>, vector<1x128x384xf32>
    %25 = vector.shape_cast %24 : vector<1x128x384xf32> to vector<128x384xf32>
    %26 = arith.index_cast %c1_i32 : i32 to index
    %c0_9 = arith.constant 0 : index
    %c0_10 = arith.constant 0 : index
    %27 = vector.load %arg2[%26, %c0_9, %c0_10] : memref<2x1x384xf32, #tpu.memory_space<vmem>>, vector<1x1x384xf32>
    %28 = vector.shape_cast %27 : vector<1x1x384xf32> to vector<1x384xf32>
    %cst_11 = arith.constant dense<0.000000e+00> : vector<8x384xf32>
    %29 = tpu.matmul %22, %25, %cst_11 {dimension_numbers = #tpu.dot_dimension_numbers<[1], [0], [0], [1], [0, 0, 1, 1], [], []>} : vector<8x128xf32>, vector<128x384xf32>, vector<8x384xf32> -> vector<8x384xf32>
    %30 = vector.broadcast %28 : vector<1x384xf32> to vector<8x384xf32>
    %31 = arith.addf %29, %30 : vector<8x384xf32>
    %32 = vector.extract_strided_slice %31 {offsets = [0, 0], sizes = [8, 128], strides = [1, 1]} : vector<8x384xf32> to vector<8x128xf32>
    %33 = arith.negf %32 : vector<8x128xf32>
    %34 = math.exp %33 : vector<8x128xf32>
    %cst_12 = arith.constant 1.000000e+00 : f32
    %35 = vector.broadcast %cst_12 : f32 to vector<8x128xf32>
    %36 = arith.addf %35, %34 : vector<8x128xf32>
    %37 = arith.divf %35, %36 : vector<8x128xf32>
    %38 = vector.extract_strided_slice %31 {offsets = [0, 128], sizes = [8, 128], strides = [1, 1]} : vector<8x384xf32> to vector<8x128xf32>
    %cst_13 = arith.constant 0.000000e+00 : f32
    %39 = vector.broadcast %cst_13 : f32 to vector<8x128xf32>
    %40 = arith.maximumf %38, %39 : vector<8x128xf32>
    %41 = vector.extract_strided_slice %31 {offsets = [0, 256], sizes = [8, 128], strides = [1, 1]} : vector<8x384xf32> to vector<8x128xf32>
    %42 = arith.subf %40, %41 : vector<8x128xf32>
    %43 = arith.mulf %37, %42 : vector<8x128xf32>
    %44 = arith.addf %41, %43 : vector<8x128xf32>
    %c2_i32 = arith.constant 2 : i32
    %c0_14 = arith.constant 0 : index
    %c0_15 = arith.constant 0 : index
    %45 = vector.load %arg3[%c0_14, %c0_15] : memref<8x128xf32, #tpu.memory_space<vmem>>, vector<8x128xf32>
    tpu.vector_store %arg3[%c0_14, %c0_15], %44 {strides = array<i32>} : memref<8x128xf32, #tpu.memory_space<vmem>>, vector<8x128xf32>,
    return
  }
}

</mosaic_0001>

<bundles_post_ra>
// kernel: tpu_custom_call.1
= control target key start
LH: loop header
LB: loop body
LE: loop exit
PB: predicated region body
PF: predicated region fallthrough
CT: control target
= control target key end

     0   :  { %8 = vsyncpa [#allocation3], 0  ;;  %s520_s0 = inlined_call_operand.hbm [shape: f32[8,128], index: 0, kind: input, shape index: {}]   ;;  %s521_s1 = inlined_call_operand.hbm [shape: f32[2,128,384], index: 1, kind: input, shape index: {}]   ;;  %s522_s2 = inlined_call_operand.hbm [shape: f32[2,1,384], index: 2, kind: input, shape index: {}]   ;;  %s523_s3 = inlined_call_operand.hbm [shape: f32[8,128], index: 3, kind: output, shape index: {}]  }
   0x1   :  { %9 = vsyncpa [#allocation6], 0  ;;  %s26_s14 = sshll.u32 %s521_s1, 4  ;;  %s27_s14 = int_to_ptr.hbm [resolvable:$true] %s26_s14 }
   0x2   :  { %10 = vsyncpa [#allocation4], 0  ;;  %s480_s15 = smov [#allocation5]   ;;  %s16_s19 = sshll.u32 %s520_s0, 4  ;;  %s17_s19 = int_to_ptr.hbm [resolvable:$true] %s16_s19 }
   0x3   :  { %s28_s16 = sshll.u32 %s480_s15, 4  ;;  %s481_s20 = smov 384   ;;  %s29_s16 = int_to_ptr.vmem [resolvable:$true] %s28_s16 }
   0x4   :  { %s482_s21 = smov 24   ;;  %s483_s22 = smov [#allocation2]  }
   0x5   :  { %34 = dma.hbm_to_vmem [thread:$0]  %s27_s14, 12288, %s29_s16, [#allocation6], %s481_s20, %s481_s20, %s482_s21  }
   0x6   :  { %s18_s23 = sshll.u32 %s483_s22, 4  ;;  %s39_s26 = sshll.u32 %s522_s2, 4  ;;  %s19_s23 = int_to_ptr.vmem [resolvable:$true] %s18_s23  ;;  %s40_s26 = int_to_ptr.hbm [resolvable:$true] %s39_s26 }
   0x7   :  { %21 = dma.hbm_to_vmem [thread:$0]  %s17_s19, 128, %s19_s23, [#allocation3]  }
   0x8   :  { %s484_s1 = smov [#allocation7]   ;;  %s485_s28 = smov 48  }
   0x9   :  { %s41_s27 = sshll.u32 %s484_s1, 4  ;;  %s486_s29 = smov 3   ;;  %s42_s27 = int_to_ptr.vmem [resolvable:$true] %s41_s27 }
   0xa   :  { %47 = dma.hbm_to_vmem [thread:$0]  %s40_s26, 96, %s42_s27, [#allocation6], %s485_s28, %s485_s28, %s486_s29  }
   0xb   :  { %474 = dma.done.wait [#allocation3], 128  }
   0xc   :  { %475 = vsyncadd [#allocation3], 4294967168 }
   0xd   :  { %476 = dma.done.wait [#allocation6], 12384  }
   0xe   :  { %477 = vsyncadd [#allocation6], 4294954912  ;;  %v106_v0 = vld [vmem:[#allocation5 + $0x168] sm:$0xff]  ;;  %v103_v1 = vld [vmem:[#allocation5 + $0x150] sm:$0xff]  ;;  %s487_s0 = smov [#allocation8]   ;;  %s349_s5 = sshll.u32 %s523_s3, 4  ;;  %s350_s5 = int_to_ptr.hbm [resolvable:$true] %s349_s5 }
   0xf   :  { %117 = vmatpush.msra.mxu0 %v106_v0  ;;  %v100_v2 = vld [vmem:[#allocation5 + $0x138] sm:$0xff]  ;;  %v97_v4 = vld [vmem:[#allocation5 + $0x120] sm:$0xff]  ;;  %v107_v6 = vld [vmem:[#allocation5 + $0x170] sm:$0xff]  ;;  %s347_s2 = sshll.u32 %s487_s0, 4  ;;  %s348_s2 = int_to_ptr.vmem [resolvable:$true] %s347_s2 }
  0x10   :  { %v108_v3 = vld [vmem:[#allocation5 + $0x178] sm:$0xff]  ;;  %v105_v5 = vld [vmem:[#allocation5 + $0x160] sm:$0xff]  ;;  %v102_v7 = vld [vmem:[#allocation5 + $0x148] sm:$0xff]  ;;  %137 = vmatpush.msra.mxu1 %v107_v6 }
  0x11   :  { %118 = vmatpush.msra.mxu0 %v103_v1  ;;  %157 = vmatpush.msra.mxu2 %v108_v3  ;;  %v94_v8 = vld [vmem:[#allocation5 + $0x108] sm:$0xff]  ;;  %v104_v9 = vld [vmem:[#allocation5 + $0x158] sm:$0xff]  ;;  %v99_v10 = vld [vmem:[#allocation5 + $0x130] sm:$0xff] }
  0x12   :  { %v101_v11 = vld [vmem:[#allocation5 + $0x140] sm:$0xff]  ;;  %v91_v12 = vld [vmem:[#allocation5 + $0xf0] sm:$0xff]  ;;  %138 = vmatpush.msra.mxu1 %v104_v9  ;;  %v96_v13 = vld [vmem:[#allocation5 + $0x118] sm:$0xff] }
  0x13   :  { %119 = vmatpush.msra.mxu0 %v100_v2  ;;  %158 = vmatpush.msra.mxu2 %v105_v5  ;;  %v98_v14 = vld [vmem:[#allocation5 + $0x128] sm:$0xff]  ;;  %v88_v15 = vld [vmem:[#allocation5 + $0xd8] sm:$0xff]  ;;  %v93_v16 = vld [vmem:[#allocation5 + $0x100] sm:$0xff] }
  0x14   :  { %139 = vmatpush.msra.mxu1 %v101_v11  ;;  %v95_v17 = vld [vmem:[#allocation5 + $0x110] sm:$0xff]  ;;  %v85_v18 = vld [vmem:[#allocation5 + $0xc0] sm:$0xff]  ;;  %v90_v19 = vld [vmem:[#allocation5 + $0xe8] sm:$0xff] }
  0x15   :  { %120 = vmatpush.msra.mxu0 %v97_v4  ;;  %159 = vmatpush.msra.mxu2 %v102_v7  ;;  %v92_v20 = vld [vmem:[#allocation5 + $0xf8] sm:$0xff]  ;;  %v82_v21 = vld [vmem:[#allocation5 + $0xa8] sm:$0xff]  ;;  %v87_v22 = vld [vmem:[#allocation5 + $0xd0] sm:$0xff] }
  0x16   :  { %140 = vmatpush.msra.mxu1 %v98_v14  ;;  %v89_v23 = vld [vmem:[#allocation5 + $0xe0] sm:$0xff]  ;;  %v79_v24 = vld [vmem:[#allocation5 + $0x90] sm:$0xff]  ;;  %v84_v25 = vld [vmem:[#allocation5 + $0xb8] sm:$0xff] }
  0x17   :  { %121 = vmatpush.msra.mxu0 %v94_v8  ;;  %160 = vmatpush.msra.mxu2 %v99_v10  ;;  %v86_v26 = vld [vmem:[#allocation5 + $0xc8] sm:$0xff]  ;;  %v76_v27 = vld [vmem:[#allocation5 + $0x78] sm:$0xff]  ;;  %v81_v28 = vld [vmem:[#allocation5 + $0xa0] sm:$0xff] }
  0x18   :  { %141 = vmatpush.msra.mxu1 %v95_v17  ;;  %v83_v29 = vld [vmem:[#allocation5 + $0xb0] sm:$0xff]  ;;  %v73_v30 = vld [vmem:[#allocation5 + $0x60] sm:$0xff]  ;;  %v78_v31 = vld [vmem:[#allocation5 + $0x88] sm:$0xff] }
  0x19   :  { %122 = vmatpush.msra.mxu0 %v91_v12  ;;  %161 = vmatpush.msra.mxu2 %v96_v13  ;;  %v80_v32 = vld [vmem:[#allocation5 + $0x98] sm:$0xff]  ;;  %v70_v33 = vld [vmem:[#allocation5 + $0x48] sm:$0xff]  ;;  %v75_v34 = vld [vmem:[#allocation5 + $0x70] sm:$0xff] }
  0x1a   :  { %142 = vmatpush.msra.mxu1 %v92_v20  ;;  %v77_v35 = vld [vmem:[#allocation5 + $0x80] sm:$0xff]  ;;  %v67_v36 = vld [vmem:[#allocation5 + $0x30] sm:$0xff]  ;;  %v72_v37 = vld [vmem:[#allocation5 + $0x58] sm:$0xff] }
  0x1b   :  { %123 = vmatpush.msra.mxu0 %v88_v15  ;;  %162 = vmatpush.msra.mxu2 %v93_v16  ;;  %v74_v38 = vld [vmem:[#allocation5 + $0x68] sm:$0xff]  ;;  %v64_v39 = vld [vmem:[#allocation5 + $0x18] sm:$0xff]  ;;  %v69_v40 = vld [vmem:[#allocation5 + $0x40] sm:$0xff] }
  0x1c   :  { %143 = vmatpush.msra.mxu1 %v89_v23  ;;  %v71_v41 = vld [vmem:[#allocation5 + $0x50] sm:$0xff]  ;;  %v61_v42 = vld [vmem:[#allocation5] sm:$0xff]  ;;  %v60_v43 = vld [vmem:[#allocation2] sm:$0xff] }
  0x1d   :  { %124 = vmatpush.msra.mxu0 %v85_v18  ;;  %163 = vmatpush.msra.mxu2 %v90_v19  ;;  %v66_v44 = vld [vmem:[#allocation5 + $0x28] sm:$0xff]  ;;  %v68_v45 = vld [vmem:[#allocation5 + $0x38] sm:$0xff]  ;;  %v63_v46 = vld [vmem:[#allocation5 + $0x10] sm:$0xff] }
  0x1e   :  { %144 = vmatpush.msra.mxu1 %v86_v26  ;;  %v65_v47 = vld [vmem:[#allocation5 + $0x20] sm:$0xff]  ;;  %v62_v48 = vld [vmem:[#allocation5 + $0x8] sm:$0xff]  ;;  %v247_v50 = vld [vmem:[#allocation5 + $0x2f0] sm:$0xff] }
  0x1f   :  { %125 = vmatpush.msra.mxu0 %v82_v21  ;;  %164 = vmatpush.msra.mxu2 %v87_v22  ;;  %v246_v49 = vld [vmem:[#allocation5 + $0x2e8] sm:$0xff]  ;;  %v248_v51 = vld [vmem:[#allocation5 + $0x2f8] sm:$0xff]  ;;  %v243_v52 = vld [vmem:[#allocation5 + $0x2d0] sm:$0xff] }
  0x20   :  { %145 = vmatpush.msra.mxu1 %v83_v29  ;;  %258 = vmatpush.msra.mxu3 %v246_v49  ;;  %v244_v53 = vld [vmem:[#allocation5 + $0x2d8] sm:$0xff]  ;;  %v245_v54 = vld [vmem:[#allocation5 + $0x2e0] sm:$0xff]  ;;  %v242_v57 = vld [vmem:[#allocation5 + $0x2c8] sm:$0xff] }
  0x21   :  { %126 = vmatpush.msra.mxu0 %v79_v24  ;;  %165 = vmatpush.msra.mxu2 %v84_v25  ;;  %v240_v55 = vld [vmem:[#allocation5 + $0x2b8] sm:$0xff]  ;;  %v241_v56 = vld [vmem:[#allocation5 + $0x2c0] sm:$0xff]  ;;  %v238_v59 = vld [vmem:[#allocation5 + $0x2a8] sm:$0xff] }
  0x22   :  { %146 = vmatpush.msra.mxu1 %v80_v32  ;;  %259 = vmatpush.msra.mxu3 %v243_v52  ;;  %v237_v58 = vld [vmem:[#allocation5 + $0x2a0] sm:$0xff]  ;;  %v239_v60 = vld [vmem:[#allocation5 + $0x2b0] sm:$0xff]  ;;  %v234_v61 = vld [vmem:[#allocation5 + $0x288] sm:$0xff] }
  0x23   :  { %127 = vmatpush.msra.mxu0 %v76_v27  ;;  %166 = vmatpush.msra.mxu2 %v81_v28  ;;  %v235_v62 = vld [vmem:[#allocation5 + $0x290] sm:$0xff]  ;;  %v236_v63 = vld [vmem:[#allocation5 + $0x298] sm:$0xff]  ;;  %v233_v2 = vld [vmem:[#allocation5 + $0x280] sm:$0xff] }
  0x24   :  { %147 = vmatpush.msra.mxu1 %v77_v35  ;;  %260 = vmatpush.msra.mxu3 %v240_v55  ;;  %v231_v0 = vld [vmem:[#allocation5 + $0x270] sm:$0xff]  ;;  %v232_v1 = vld [vmem:[#allocation5 + $0x278] sm:$0xff]  ;;  %v229_v4 = vld [vmem:[#allocation5 + $0x260] sm:$0xff] }
  0x25   :  { %128 = vmatpush.msra.mxu0 %v73_v30  ;;  %167 = vmatpush.msra.mxu2 %v78_v31  ;;  %v228_v3 = vld [vmem:[#allocation5 + $0x258] sm:$0xff]  ;;  %v230_v5 = vld [vmem:[#allocation5 + $0x268] sm:$0xff]  ;;  %v225_v6 = vld [vmem:[#allocation5 + $0x240] sm:$0xff] }
  0x26   :  { %148 = vmatpush.msra.mxu1 %v74_v38  ;;  %261 = vmatpush.msra.mxu3 %v237_v58  ;;  %v226_v7 = vld [vmem:[#allocation5 + $0x248] sm:$0xff]  ;;  %v227_v8 = vld [vmem:[#allocation5 + $0x250] sm:$0xff]  ;;  %v224_v11 = vld [vmem:[#allocation5 + $0x238] sm:$0xff] }
  0x27   :  { %129 = vmatpush.msra.mxu0 %v70_v33  ;;  %168 = vmatpush.msra.mxu2 %v75_v34  ;;  %v222_v9 = vld [vmem:[#allocation5 + $0x228] sm:$0xff]  ;;  %v223_v10 = vld [vmem:[#allocation5 + $0x230] sm:$0xff]  ;;  %v220_v13 = vld [vmem:[#allocation5 + $0x218] sm:$0xff] }
  0x28   :  { %149 = vmatpush.msra.mxu1 %v71_v41  ;;  %262 = vmatpush.msra.mxu3 %v234_v61  ;;  %v219_v12 = vld [vmem:[#allocation5 + $0x210] sm:$0xff]  ;;  %v221_v14 = vld [vmem:[#allocation5 + $0x220] sm:$0xff]  ;;  %v216_v15 = vld [vmem:[#allocation5 + $0x1f8] sm:$0xff] }
  0x29   :  { %130 = vmatpush.msra.mxu0 %v67_v36  ;;  %169 = vmatpush.msra.mxu2 %v72_v37  ;;  %v217_v16 = vld [vmem:[#allocation5 + $0x200] sm:$0xff]  ;;  %v218_v17 = vld [vmem:[#allocation5 + $0x208] sm:$0xff]  ;;  %v215_v20 = vld [vmem:[#allocation5 + $0x1f0] sm:$0xff] }
  0x2a   :  { %150 = vmatpush.msra.mxu1 %v68_v45  ;;  %263 = vmatpush.msra.mxu3 %v231_v0  ;;  %v213_v18 = vld [vmem:[#allocation5 + $0x1e0] sm:$0xff]  ;;  %v214_v19 = vld [vmem:[#allocation5 + $0x1e8] sm:$0xff]  ;;  %v211_v23 = vld [vmem:[#allocation5 + $0x1d0] sm:$0xff] }
  0x2b   :  { %131 = vmatpush.msra.mxu0 %v64_v39  ;;  %170 = vmatpush.msra.mxu2 %v69_v40  ;;  %v109_v21 = vld [vmem:[#allocation7] sm:$0x7]  ;;  %v210_v22 = vld [vmem:[#allocation5 + $0x1c8] sm:$0xff]  ;;  %v212_v24 = vld [vmem:[#allocation5 + $0x1d8] sm:$0xff] }
  0x2c   :  { %151 = vmatpush.msra.mxu1 %v65_v47  ;;  %264 = vmatpush.msra.mxu3 %v228_v3  ;;  %v111_v25 = vperm.slane %v109_v21, 0  ;;  %v207_v26 = vld [vmem:[#allocation5 + $0x1b0] sm:$0xff]  ;;  %v208_v27 = vld [vmem:[#allocation5 + $0x1b8] sm:$0xff]  ;;  %v209_v28 = vld [vmem:[#allocation5 + $0x1c0] sm:$0xff]  ;;  %v112_v40 = vperm.slane %v109_v21, 1 }
  0x2d   :  { %132 = vmatpush.msra.mxu0 %v61_v42  ;;  %171 = vmatpush.msra.mxu2 %v66_v44  ;;  %v204_v29 = vld [vmem:[#allocation5 + $0x198] sm:$0xff]  ;;  %v205_v30 = vld [vmem:[#allocation5 + $0x1a0] sm:$0xff]  ;;  %v206_v31 = vld [vmem:[#allocation5 + $0x1a8] sm:$0xff] }
  0x2e   :  { %133 = vmatmul.f32.vlgmr.msra.gmra.mxu0 %v60_v43  ;;  %152 = vmatpush.msra.mxu1 %v62_v48  ;;  %v201_v34 = vld [vmem:[#allocation5 + $0x180] sm:$0xff]  ;;  %v202_v35 = vld [vmem:[#allocation5 + $0x188] sm:$0xff]  ;;  %v203_v36 = vld [vmem:[#allocation5 + $0x190] sm:$0xff] }
  0x2f   :  { %172 = vmatpush.msra.mxu2 %v63_v46  ;;  %153 = vmatmul.f32.vlgmr.msra.gmra.mxu1 %v60_v43 }
  0x30   :  { %173 = vmatmul.f32.vlgmr.msra.gmra.mxu2 %v60_v43  ;;  %278 = vmatpush.msrb.mxu0 %v247_v50  ;;  %v113_v43 = vperm.slane %v109_v21, 2 }
  0x31   :  { %298 = vmatpush.msrb.mxu1 %v248_v51  ;;  %265 = vmatpush.msra.mxu3 %v225_v6 }
  0x32   :  { %279 = vmatpush.msrb.mxu0 %v244_v53 }
  0x33   :  { %299 = vmatpush.msrb.mxu1 %v245_v54  ;;  %266 = vmatpush.msra.mxu3 %v222_v9 }
  0x34   :  { %280 = vmatpush.msrb.mxu0 %v241_v56 }
  0x35   :  { %300 = vmatpush.msrb.mxu1 %v242_v57  ;;  %267 = vmatpush.msra.mxu3 %v219_v12 }
  0x36   :  { %281 = vmatpush.msrb.mxu0 %v238_v59 }
  0x37   :  { %301 = vmatpush.msrb.mxu1 %v239_v60  ;;  %268 = vmatpush.msra.mxu3 %v216_v15  ;;  %v250_v60 = vld [vmem:[#allocation7 + $0x3] sm:$0x7] }
  0x38   :  { %282 = vmatpush.msrb.mxu0 %v235_v62  ;;  %v252_v61 = vperm.slane %v250_v60, 0  ;;  %v253_v3 = vperm.slane %v250_v60, 1 }
  0x39   :  { %302 = vmatpush.msrb.mxu1 %v236_v63  ;;  %269 = vmatpush.msra.mxu3 %v213_v18 }
  0x3a   :  { %283 = vmatpush.msrb.mxu0 %v232_v1 }
  0x3b   :  { %303 = vmatpush.msrb.mxu1 %v233_v2  ;;  %270 = vmatpush.msra.mxu3 %v210_v22 }
  0x3c   :  { %284 = vmatpush.msrb.mxu0 %v229_v4 }
  0x3d   :  { %304 = vmatpush.msrb.mxu1 %v230_v5  ;;  %271 = vmatpush.msra.mxu3 %v207_v26 }
  0x3e   :  { %285 = vmatpush.msrb.mxu0 %v226_v7 }
  0x3f   :  { %305 = vmatpush.msrb.mxu1 %v227_v8  ;;  %272 = vmatpush.msra.mxu3 %v204_v29  ;;  %v254_v8 = vperm.slane %v250_v60, 2 }
  0x40   :  { %286 = vmatpush.msrb.mxu0 %v223_v10 }
  0x41   :  { %306 = vmatpush.msrb.mxu1 %v224_v11  ;;  %273 = vmatpush.msra.mxu3 %v201_v34 }
  0x42   :  { %287 = vmatpush.msrb.mxu0 %v220_v13 }
  0x43   :  { %307 = vmatpush.msrb.mxu1 %v221_v14 }
  0x44   :  { %288 = vmatpush.msrb.mxu0 %v217_v16 }
  0x45   :  { %308 = vmatpush.msrb.mxu1 %v218_v17 }
  0x46   :  { %289 = vmatpush.msrb.mxu0 %v214_v19 }
  0x47   :  { %309 = vmatpush.msrb.mxu1 %v215_v20 }
  0x48   :  { %290 = vmatpush.msrb.mxu0 %v211_v23 }
  0x49   :  { %310 = vmatpush.msrb.mxu1 %v212_v24 }
  0x4a   :  { %291 = vmatpush.msrb.mxu0 %v208_v27 }
  0x4b   :  { %311 = vmatpush.msrb.mxu1 %v209_v28 }
  0x4c   :  { %292 = vmatpush.msrb.mxu0 %v205_v30 }
  0x4d   :  { %312 = vmatpush.msrb.mxu1 %v206_v31 }
  0x4e   :  { %293 = vmatpush.msrb.mxu0 %v202_v35 }
  0x4f   :  { %313 = vmatpush.msrb.mxu1 %v203_v36 }
  0xab   :  { %v134_v32 = vpop.f32.mrf.mxu0 }
  0xac   :  { %v135_v33 = vadd.f32 %v134_v32, %v111_v25  ;;  %v154_v41 = vpop.f32.mrf.mxu1 }
  0xad   :  { %v155_v42 = vadd.f32 %v154_v41, %v112_v40 }
  0xae   :  { %v360_v37 = vmul.f32 -1.442695, %v135_v33 }
  0xaf   :  { %v196_v47 = vmax.f32 %v155_v42, 0.0 }
  0xb0   :  { %370 = vpow2.f32 %v360_v37 }
  0xb3   :  { %v174_v45 = vpop.f32.mrf.mxu2 }
  0xb4   :  { %v175_v48 = vadd.f32 %v174_v45, %v113_v43 }
  0xb6   :  { %v371_v38 = vpop.eup %370  ;;  %v197_v54 = vsub.f32 %v196_v47, %v175_v48 }
  0xb7   :  { %v180_v39 = vadd.f32 1.0, %v371_v38 }
  0xb9   :  { %372 = vrcp.f32 %v180_v39  ;;  %v192_v50 = vand.u32 2147483648, %v180_v39  ;;  %v190_v52 = vand.u32 2147483647, %v180_v39  ;;  %vm186_vm1 = vweird.f32 %v180_v39 }
  0xbb   :  { %v193_v55 = vor.u32 1.1754944e-38, %v192_v50  ;;  %vm191_vm3 = vcmp.eq.f32.partialorder %v190_v52, 8.507059e+37 }
  0xbf   :  { %v373_v44 = vpop.eup %372 }
  0xc0   :  { %v182_v46 = vmul.f32 %v373_v44, %v180_v39  ;;  %vm187_vm0 = vweird.f32 %v373_v44 }
  0xc1   :  { %vm188_vm2 = vmor %vm186_vm1, %vm187_vm0 }
  0xc2   :  { %v183_v49 = vsub.f32 1.0, %v182_v46 }
  0xc4   :  { %v184_v51 = vmul.f32 %v373_v44, %v183_v49 }
  0xc6   :  { %v185_v53 = vadd.f32 %v373_v44, %v184_v51 }
  0xc8   :  { %v189_v56 = vsel %vm188_vm2, %v373_v44, %v185_v53 }
  0xc9   :  { %v194_v57 = vsel %vm191_vm3, %v193_v55, %v189_v56 }
  0xca   :  { %v198_v58 = vmul.f32 %v197_v54, %v194_v57 }
  0xcc   :  { %v199_v59 = vadd.f32 %v198_v58, %v175_v48 }
  0xce   :  { %274 = vmatmul.f32.vlgmr.msra.gmra.mxu3 %v199_v59  ;;  %294 = vmatmul.f32.vlgmr.msrb.gmra.mxu0 %v199_v59 }
  0xcf   :  { %314 = vmatmul.f32.vlgmr.msrb.gmra.mxu1 %v199_v59 }
 0x14b   :  { %v295_v4 = vpop.f32.mrf.mxu0 }
 0x14c   :  { %v296_v6 = vadd.f32 %v295_v4, %v253_v3  ;;  %v315_v10 = vpop.f32.mrf.mxu1 }
 0x14d   :  { %v316_v15 = vadd.f32 %v315_v10, %v254_v8 }
 0x14e   :  { %v337_v12 = vmax.f32 %v296_v6, 0.0 }
 0x150   :  { %v338_v18 = vsub.f32 %v337_v12, %v316_v15 }
 0x151   :  { %v275_v62 = vpop.f32.mrf.mxu3 }
 0x152   :  { %v276_v63 = vadd.f32 %v275_v62, %v252_v61 }
 0x154   :  { %v361_v0 = vmul.f32 -1.442695, %v276_v63 }
 0x156   :  { %374 = vpow2.f32 %v361_v0 }
 0x15c   :  { %v375_v1 = vpop.eup %374 }
 0x15d   :  { %v321_v2 = vadd.f32 1.0, %v375_v1 }
 0x15f   :  { %376 = vrcp.f32 %v321_v2  ;;  %v333_v11 = vand.u32 2147483648, %v321_v2  ;;  %v331_v14 = vand.u32 2147483647, %v321_v2  ;;  %vm327_vm5 = vweird.f32 %v321_v2 }
 0x161   :  { %v334_v17 = vor.u32 1.1754944e-38, %v333_v11  ;;  %vm332_vm7 = vcmp.eq.f32.partialorder %v331_v14, 8.507059e+37 }
 0x165   :  { %v377_v5 = vpop.eup %376 }
 0x166   :  { %v323_v7 = vmul.f32 %v377_v5, %v321_v2  ;;  %vm328_vm4 = vweird.f32 %v377_v5 }
 0x167   :  { %vm329_vm6 = vmor %vm327_vm5, %vm328_vm4 }
 0x168   :  { %v324_v9 = vsub.f32 1.0, %v323_v7 }
 0x16a   :  { %v325_v13 = vmul.f32 %v377_v5, %v324_v9 }
 0x16c   :  { %v326_v16 = vadd.f32 %v377_v5, %v325_v13 }
 0x16e   :  { %v330_v19 = vsel %vm329_vm6, %v377_v5, %v326_v16 }
 0x16f   :  { %v335_v20 = vsel %vm332_vm7, %v334_v17, %v330_v19 }
 0x170   :  { %v339_v21 = vmul.f32 %v338_v18, %v335_v20 }
 0x172   :  { %v340_v22 = vadd.f32 %v339_v21, %v316_v15 }
 0x174   :  { %341 = vst [vmem:[#allocation8] sm:$0xff] %v340_v22 }
 0x175   :  { %352 = dma.vmem_to_hbm [thread:$0]  %s348_s2, 128, %s350_s5, [#allocation4]  }
 0x176   :  { %478 = dma.done.wait [#allocation4], 128  }
 0x177   :  { %479 = vsyncadd [#allocation4], 4294967168 }
 0x178   :  { %357 = vsyncpa [#allocation3], 1 }
 0x179   :  { %358 = vsyncpa [#allocation6], 1 }
 0x17a   :  { %359 = vsyncpa [#allocation4], 1 }

</bundles_post_ra>
